<compile_context>
chip_gen: v6e
topology: v6e:2x2x1
jax: 0.10.0
libtpu: 0.0.40
codegen_flags: <defaults>
</compile_context>

<pallas_src>
import functools

import jax
import jax.numpy as jnp
from jax.experimental import pallas as pl
from jax.experimental.pallas import tpu as pltpu


def _round_up(x: int, m: int) -> int:
    return ((x + m - 1) // m) * m


def _sublane_multiple(dtype) -> int:
    # f32 -> 8, bf16/f16 -> 16, int8/fp8 -> 32 (packed vreg min-tile rows).
    return max(8, 32 // jnp.dtype(dtype).itemsize)


def _vmem_budget_bytes() -> int:
    # Generation-aware scoped-VMEM budget with ~25% headroom
    # (v5e/v6e: 128 MiB physical -> 96 MiB, v7x: 64 MiB -> 48 MiB).
    try:
        cap = int(pltpu.get_tpu_info().vmem_capacity_bytes)
    except Exception:
        cap = 64 * 1024 * 1024
    return max(32 * 1024 * 1024, (cap * 3) // 4)


def _linear_kernel_acc(x_ref, w_ref, o_ref, acc_ref):
    # x_ref: (tm, tk), w_ref: (tn, tk)  [PyTorch (N, K) layout], o_ref: (tm, tn)
    # Low-precision output: accumulate in an f32 VMEM scratch, cast at the end.
    @pl.when(pl.program_id(2) == 0)
    def _():
        acc_ref[...] = jnp.zeros_like(acc_ref)

    acc_ref[...] += jax.lax.dot_general(
        x_ref[...],
        w_ref[...],
        dimension_numbers=(((1,), (1,)), ((), ())),
        preferred_element_type=jnp.float32,
    )

    @pl.when(pl.program_id(2) == pl.num_programs(2) - 1)
    def _():
        o_ref[...] = acc_ref[...].astype(o_ref.dtype)


def _linear_kernel_f32_out(x_ref, w_ref, o_ref):
    # f32 output: the output block is resident across the K axis, so we
    # accumulate directly into it (no scratch, no final cast/copy pass).
    @pl.when(pl.program_id(2) == 0)
    def _():
        o_ref[...] = jnp.zeros_like(o_ref)

    o_ref[...] += jax.lax.dot_general(
        x_ref[...],
        w_ref[...],
        dimension_numbers=(((1,), (1,)), ((), ())),
        preferred_element_type=jnp.float32,
    )


@functools.partial(
    jax.jit, static_argnames=("tile_m", "tile_n", "tile_k", "force_kernel")
)
def parallel_linear_1d_col(x, weight, tile_m=512, tile_n=512, tile_k=1024,
                           force_kernel=False):
    """Forward of ParallelLinear1D_Col: x @ weight.T (bias NOT added).

    x:      (..., in_features)
    weight: (out_features_per_partition, in_features)   -- PyTorch layout
    returns (..., out_features_per_partition)
    """
    *lead, k = x.shape
    n, k_w = weight.shape
    assert k == k_w, "in_features mismatch"

    out_dtype = x.dtype
    x2d = x.reshape(-1, k)
    m = x2d.shape[0]

    # Tiny problems: pad + kernel-launch + slice overhead beats the kernel.
    if not force_kernel and (m * n * k) < (1 << 21):
        out2d = jnp.einsum("mk,nk->mn", x2d, weight).astype(out_dtype)
        return out2d.reshape(*lead, n)

    sub_m = _sublane_multiple(x.dtype)
    tm = min(_round_up(tile_m, sub_m), _round_up(m, sub_m))
    tn = min(_round_up(tile_n, 128), _round_up(n, 128))   # lane-dense output
    tk = min(_round_up(tile_k, 128), _round_up(k, 128))

    x_bytes = jnp.dtype(x.dtype).itemsize
    w_bytes = jnp.dtype(weight.dtype).itemsize
    o_bytes = jnp.dtype(out_dtype).itemsize
    needs_acc = out_dtype != jnp.float32

    budget = _vmem_budget_bytes()

    def vmem_est(tm_, tn_, tk_):
        est = (2 * tm_ * tk_ * x_bytes          # double-buffered x tile
               + 2 * tn_ * tk_ * w_bytes        # double-buffered weight tile
               + 2 * tm_ * tn_ * o_bytes)       # output tile
        if needs_acc:
            est += tm_ * tn_ * 4                # f32 accumulator scratch
        return est

    # Auto-shrink tiles that would not fit this generation's VMEM.
    while vmem_est(tm, tn, tk) > (budget * 4) // 5:
        if tk > 128:
            tk = max(128, _round_up(tk // 2, 128))
        elif tn > 128:
            tn = max(128, _round_up(tn // 2, 128))
        elif tm > sub_m:
            tm = max(sub_m, _round_up(tm // 2, sub_m))
        else:
            break

    m_pad = _round_up(m, tm)
    n_pad = _round_up(n, tn)
    k_pad = _round_up(k, tk)

    if (m_pad, k_pad) != (m, k):
        x2d = jnp.pad(x2d, ((0, m_pad - m), (0, k_pad - k)))
    w = weight
    if (n_pad, k_pad) != (n, k):
        # Only fires for unaligned shapes; weight keeps its (N, K) layout so
        # no transpose pass is ever paid.
        w = jnp.pad(w, ((0, n_pad - n), (0, k_pad - k)))

    grid = (m_pad // tm, n_pad // tn, k_pad // tk)

    cost = pl.CostEstimate(
        flops=2 * m_pad * n_pad * k_pad,
        transcendentals=0,
        bytes_accessed=(m_pad * k_pad * x_bytes
                        + n_pad * k_pad * w_bytes
                        + m_pad * n_pad * o_bytes),
    )

    if needs_acc:
        kernel = _linear_kernel_acc
        scratch = [pltpu.VMEM((tm, tn), jnp.float32)]
    else:
        kernel = _linear_kernel_f32_out
        scratch = []

    out = pl.pallas_call(
        kernel,
        out_shape=jax.ShapeDtypeStruct((m_pad, n_pad), out_dtype),
        grid_spec=pltpu.PrefetchScalarGridSpec(
            num_scalar_prefetch=0,
            grid=grid,
            in_specs=[
                pl.BlockSpec((tm, tk), lambda i, j, kk: (i, kk)),
                pl.BlockSpec((tn, tk), lambda i, j, kk: (j, kk)),
            ],
            out_specs=pl.BlockSpec((tm, tn), lambda i, j, kk: (i, j)),
            scratch_shapes=scratch,
        ),
        compiler_params=pltpu.CompilerParams(
            dimension_semantics=("parallel", "parallel", "arbitrary"),
            vmem_limit_bytes=int(budget),
        ),
        cost_estimate=cost,
    )(x2d, w)

    out = out[:m, :n]
    return out.reshape(*lead, n)


if __name__ == "__main__":
    # Module config (small, consistent with the PyTorch module):
    in_features = 32
    out_features = 64
    num_parallel = 2
    out_pp = out_features // num_parallel  # 32

    key = jax.random.PRNGKey(0)
    kx, kw, kb, kx2, kw2 = jax.random.split(key, 5)

    # Deterministic parameter init (torch.randn analogue).
    weight = jax.random.normal(kw, (out_pp, in_features), dtype=jnp.float32)
    bias = jax.random.normal(kb, (out_pp,), dtype=jnp.float32)
    # NOTE: bias is created in __init__ but never added in forward (matches
    # the PyTorch module exactly), so it is intentionally unused here.

    # Test 1: small module-consistent shapes, force the Pallas kernel path
    # (f32 output -> direct-accumulate kernel, no scratch).
    x = jax.random.normal(kx, (2, 8, in_features), dtype=jnp.float32)
    out = parallel_linear_1d_col(x, weight, force_kernel=True)
    out = jax.block_until_ready(out)
    ref = jnp.einsum("bsk,nk->bsn", x, weight,
                     precision=jax.lax.Precision.HIGHEST)
    assert out.shape == (2, 8, out_pp)
    assert jnp.allclose(out, ref, atol=1e-4, rtol=1e-4)

    # Test 2: bf16 inputs with small tiles to exercise the multi-block grid
    # and the f32-scratch accumulation path (grid = (1, 2, 2)).
    x2 = jax.random.normal(kx2, (16, 256), dtype=jnp.float32).astype(jnp.bfloat16)
    w2 = jax.random.normal(kw2, (256, 256), dtype=jnp.float32).astype(jnp.bfloat16)
    out2 = parallel_linear_1d_col(
        x2, w2, tile_m=16, tile_n=128, tile_k=128, force_kernel=True)
    out2 = jax.block_until_ready(out2)
    ref2 = jnp.einsum("mk,nk->mn",
                      x2.astype(jnp.float32), w2.astype(jnp.float32),
                      precision=jax.lax.Precision.HIGHEST)
    assert out2.shape == (16, 256)
    assert jnp.allclose(out2.astype(jnp.float32), ref2, atol=0.5, rtol=5e-2)

    print("KERNEL_OK")
</pallas_src>

<mosaic_0001>
module attributes {stable_mosaic.version = 11 : i64} {
  func.func @_linear_kernel_f32_out(%arg0: i32, %arg1: i32, %arg2: i32, %arg3: memref<16x128xf32, #tpu.memory_space<vmem>>, %arg4: memref<128x128xf32, #tpu.memory_space<vmem>>, %arg5: memref<16x128xf32, #tpu.memory_space<vmem>>) attributes {dimension_semantics = [#tpu.dimension_semantics<parallel>, #tpu.dimension_semantics<parallel>, #tpu.dimension_semantics<arbitrary>], iteration_bounds = array<i64: 1, 1, 1>, scalar_prefetch = 0 : i64, scratch_operands = 0 : i64, tpu.core_type = #tpu.core_type<tc>, window_params = [{transform_indices = @transform_0, window_bounds = array<i64: 16, 128>}, {transform_indices = @transform_1, window_bounds = array<i64: 128, 128>}, {transform_indices = @transform_2, window_bounds = array<i64: 16, 128>}]} {
    %c0_i32 = arith.constant 0 : i32
    %0 = arith.cmpi eq, %arg2, %c0_i32 : i32
    %1 = arith.extui %0 : i1 to i32
    %c0_i32_0 = arith.constant 0 : i32
    %2 = arith.cmpi ne, %1, %c0_i32_0 : i32
    scf.if %2 {
      %cst_8 = arith.constant 0.000000e+00 : f32
      %9 = vector.broadcast %cst_8 : f32 to vector<16x128xf32>
      %c0_9 = arith.constant 0 : index
      %c0_10 = arith.constant 0 : index
      %10 = vector.load %arg5[%c0_9, %c0_10] : memref<16x128xf32, #tpu.memory_space<vmem>>, vector<16x128xf32>
      tpu.vector_store %arg5[%c0_9, %c0_10], %9 {strides = array<i32>} : memref<16x128xf32, #tpu.memory_space<vmem>>, vector<16x128xf32>,
    } else {
    }
    %c0 = arith.constant 0 : index
    %c0_1 = arith.constant 0 : index
    %3 = vector.load %arg5[%c0, %c0_1] : memref<16x128xf32, #tpu.memory_space<vmem>>, vector<16x128xf32>
    %c0_2 = arith.constant 0 : index
    %c0_3 = arith.constant 0 : index
    %4 = vector.load %arg3[%c0_2, %c0_3] : memref<16x128xf32, #tpu.memory_space<vmem>>, vector<16x128xf32>
    %c0_4 = arith.constant 0 : index
    %c0_5 = arith.constant 0 : index
    %5 = vector.load %arg4[%c0_4, %c0_5] : memref<128x128xf32, #tpu.memory_space<vmem>>, vector<128x128xf32>
    %cst = arith.constant dense<0.000000e+00> : vector<16x128xf32>
    %6 = tpu.matmul %4, %5, %cst {dimension_numbers = #tpu.dot_dimension_numbers<[1], [1], [0], [0], [0, 0, 1, 0], [], []>} : vector<16x128xf32>, vector<128x128xf32>, vector<16x128xf32> -> vector<16x128xf32>
    %7 = arith.addf %3, %6 : vector<16x128xf32>
    %c0_6 = arith.constant 0 : index
    %c0_7 = arith.constant 0 : index
    %8 = vector.load %arg5[%c0_6, %c0_7] : memref<16x128xf32, #tpu.memory_space<vmem>>, vector<16x128xf32>
    tpu.vector_store %arg5[%c0_6, %c0_7], %7 {strides = array<i32>} : memref<16x128xf32, #tpu.memory_space<vmem>>, vector<16x128xf32>,
    return
  }
  func.func @transform_0(%arg0: i32, %arg1: i32, %arg2: i32) -> (i32, i32) {
    %c0_i32 = arith.constant 0 : i32
    return %arg0, %arg2 : i32, i32
  }
  func.func @transform_1(%arg0: i32, %arg1: i32, %arg2: i32) -> (i32, i32) {
    %c0_i32 = arith.constant 0 : i32
    return %arg1, %arg2 : i32, i32
  }
  func.func @transform_2(%arg0: i32, %arg1: i32, %arg2: i32) -> (i32, i32) {
    %c0_i32 = arith.constant 0 : i32
    return %arg0, %arg1 : i32, i32
  }
}

</mosaic_0001>

<bundles_post_ra>
// kernel: parallel_linear_1d_col.1
= control target key start
LH: loop header
LB: loop body
LE: loop exit
PB: predicated region body
PF: predicated region fallthrough
CT: control target
= control target key end

     0   :  { %s249_s1 = inlined_call_operand.vmem [shape: f32[128,128], index: 1, kind: input, shape index: {}]   ;;  %s250_s0 = inlined_call_operand.vmem [shape: f32[16,128], index: 0, kind: input, shape index: {}]   ;;  %s251_s2 = inlined_call_operand.vmem [shape: f32[16,128], index: 2, kind: output, shape index: {}]  }
   0x1   :  { %v36_v0 = vld [vmem:[%s249_s1 + $0x78] sm:$0xff]  ;;  %v35_v1 = vld [vmem:[%s249_s1 + $0x70] sm:$0xff]  ;;  %v34_v2 = vld [vmem:[%s249_s1 + $0x68] sm:$0xff] }
   0x2   :  { %138 = vmatprep.subr.mxu0 %v36_v0  ;;  %v19_v3 = vld [vmem:[%s250_s0] sm:$0xff]  ;;  %v32_v5 = vld [vmem:[%s249_s1 + $0x58] sm:$0xff]  ;;  %v31_v6 = vld [vmem:[%s249_s1 + $0x50] sm:$0xff] }
   0x3   :  { %139 = vmatpush3.xpose.msra.mxu0 %v36_v0  ;;  %170 = vmatprep.mubr.f32.mxu0 %v19_v3  ;;  %v33_v4 = vld [vmem:[%s249_s1 + $0x60] sm:$0xff]  ;;  %v30_v7 = vld [vmem:[%s249_s1 + $0x48] sm:$0xff]  ;;  %v28_v9 = vld [vmem:[%s249_s1 + $0x38] sm:$0xff] }
   0x4   :  { %140 = vmatprep.subr.mxu0 %v35_v1  ;;  %v29_v8 = vld [vmem:[%s249_s1 + $0x40] sm:$0xff]  ;;  %v27_v10 = vld [vmem:[%s249_s1 + $0x30] sm:$0xff]  ;;  %v26_v11 = vld [vmem:[%s249_s1 + $0x28] sm:$0xff] }
   0x5   :  { %v25_v12 = vld [vmem:[%s249_s1 + $0x20] sm:$0xff]  ;;  %v24_v13 = vld [vmem:[%s249_s1 + $0x18] sm:$0xff]  ;;  %v23_v14 = vld [vmem:[%s249_s1 + $0x10] sm:$0xff] }
   0x6   :  { %v22_v15 = vld [vmem:[%s249_s1 + $0x8] sm:$0xff]  ;;  %v21_v16 = vld [vmem:[%s249_s1] sm:$0xff] }
   0x7   :  { %141 = vmatpush3.xpose.msra.mxu0 %v35_v1  ;;  %v20_v17 = vld [vmem:[%s250_s0 + $0x8] sm:$0xff] }
   0x8   :  { %142 = vmatprep.subr.mxu0 %v34_v2 }
   0xb   :  { %143 = vmatpush3.xpose.msra.mxu0 %v34_v2 }
   0xc   :  { %144 = vmatprep.subr.mxu0 %v33_v4 }
   0xf   :  { %145 = vmatpush3.xpose.msra.mxu0 %v33_v4 }
  0x10   :  { %146 = vmatprep.subr.mxu0 %v32_v5 }
  0x13   :  { %147 = vmatpush3.xpose.msra.mxu0 %v32_v5 }
  0x14   :  { %148 = vmatprep.subr.mxu0 %v31_v6 }
  0x17   :  { %149 = vmatpush3.xpose.msra.mxu0 %v31_v6 }
  0x18   :  { %150 = vmatprep.subr.mxu0 %v30_v7 }
  0x1b   :  { %151 = vmatpush3.xpose.msra.mxu0 %v30_v7 }
  0x1c   :  { %152 = vmatprep.subr.mxu0 %v29_v8 }
  0x1f   :  { %153 = vmatpush3.xpose.msra.mxu0 %v29_v8 }
  0x20   :  { %154 = vmatprep.subr.mxu0 %v28_v9 }
  0x23   :  { %155 = vmatpush3.xpose.msra.mxu0 %v28_v9 }
  0x24   :  { %156 = vmatprep.subr.mxu0 %v27_v10 }
  0x27   :  { %157 = vmatpush3.xpose.msra.mxu0 %v27_v10 }
  0x28   :  { %158 = vmatprep.subr.mxu0 %v26_v11 }
  0x2b   :  { %159 = vmatpush3.xpose.msra.mxu0 %v26_v11 }
  0x2c   :  { %160 = vmatprep.subr.mxu0 %v25_v12 }
  0x2f   :  { %161 = vmatpush3.xpose.msra.mxu0 %v25_v12 }
  0x30   :  { %162 = vmatprep.subr.mxu0 %v24_v13 }
  0x33   :  { %163 = vmatpush3.xpose.msra.mxu0 %v24_v13 }
  0x34   :  { %164 = vmatprep.subr.mxu0 %v23_v14 }
  0x37   :  { %165 = vmatpush3.xpose.msra.mxu0 %v23_v14 }
  0x38   :  { %166 = vmatprep.subr.mxu0 %v22_v15 }
  0x3b   :  { %167 = vmatpush3.xpose.msra.mxu0 %v22_v15 }
  0x3c   :  { %168 = vmatprep.subr.mxu0 %v21_v16 }
  0x3f   :  { %169 = vmatpush3.xpose.msra.mxu0 %v21_v16 }
  0x42   :  { %171 = vmatmul.mubr.f32.vlgmr.msra.gmra.mxu0 %v20_v17 }
 0x102   :  { %v172_v18 = vpop.f32.mrf.mxu0 }
 0x103   :  { %115 = vst [vmem:[%s251_s2 + $0x8] sm:$0xff] %v172_v18 }
 0x104   :  { %v103_v19 = vpop.f32.mrf.mxu0 }
 0x105   :  { %114 = vst [vmem:[%s251_s2] sm:$0xff] %v103_v19 }

</bundles_post_ra>
